<compile_context>
chip_gen: v7x
topology: tpu7x:2x2x1
jax: 0.10.0
libtpu: 0.0.40
codegen_flags: <defaults>
</compile_context>

<pallas_src>
import math
from functools import partial

import jax
import jax.numpy as jnp
from jax import lax
from jax.experimental import pallas as pl
from jax.experimental.pallas import tpu as pltpu

LN_EPS = 1e-5
EMA_EPS = 1e-5
LANE = 128
SUBLANE = 8


def _round_up(n, m):
    return ((n + m - 1) // m) * m


def obs_seg_dims(obs_tensors):
    """Flattened feature width of each of the 7 observation segments."""
    segs = obs_tensors[:7]
    return tuple(int(math.prod(t.shape[1:])) for t in segs)


# --------------------------------------------------------------------------- #
# Kernel
# --------------------------------------------------------------------------- #
def critic_kernel(self_ref, team_ref, opp_ref, lidar_ref, hp_ref, mag_ref,
                  alive_ref, w1_ref, w2_ref, vec_ref, out_ref,
                  *, c_real, seg_rows):
    """One (tb, .) batch tile: folded Linear1 + LN + ReLU, Linear2 + LN + ReLU.

    vec_ref rows: 0=b1(folded), 1=gamma1, 2=beta1, 3=b2, 4=gamma2, 5=beta2.
    seg_rows: static (row_offset, rows) of each obs segment inside w1_ref.
    """
    inv_c = 1.0 / float(c_real)
    w_dtype = w1_ref.dtype

    def ln_relu(h, g, be):
        # Single-pass stats over the full (zero-padded) lane width.  Padded
        # lanes of h are exactly zero (zero weight cols / zero bias padding),
        # so dividing full-lane sums by the REAL channel count is exact.
        s = jnp.sum(h, axis=-1, keepdims=True)
        ss = jnp.sum(h * h, axis=-1, keepdims=True)
        mean = s * inv_c
        var = ss * inv_c - mean * mean
        hn = (h - mean) * lax.rsqrt(var + LN_EPS)
        # gamma/beta padded with zeros -> padded output lanes stay exactly zero.
        return jnp.maximum(hn * g + be, 0.0)

    obs_refs = (self_ref, team_ref, opp_ref, lidar_ref, hp_ref, mag_ref,
                alive_ref)

    # ---- Layer 1: EMA-folded Linear as per-segment partial matmuls ---------
    # Activations are cast to the weight dtype (bf16 by default) on the VPU;
    # accumulation stays f32 via preferred_element_type.
    h = None
    for x_ref, (row, d) in zip(obs_refs, seg_rows):
        part = jnp.dot(x_ref[...].astype(w_dtype),
                       w1_ref[pl.ds(row, d), :],
                       preferred_element_type=jnp.float32)
        h = part if h is None else h + part
    h = h + vec_ref[pl.ds(0, 1), :]
    h = ln_relu(h, vec_ref[pl.ds(1, 1), :], vec_ref[pl.ds(2, 1), :])

    # ---- Layer 2 ------------------------------------------------------------
    h = jnp.dot(h.astype(w_dtype), w2_ref[...],
                preferred_element_type=jnp.float32) + vec_ref[pl.ds(3, 1), :]
    h = ln_relu(h, vec_ref[pl.ds(4, 1), :], vec_ref[pl.ds(5, 1), :])

    out_ref[...] = h.astype(out_ref.dtype)


# --------------------------------------------------------------------------- #
# One-time parameter preparation: EMA fold + lane/sublane-dense zero padding.
# --------------------------------------------------------------------------- #
def prepare_params(params, seg_dims, *, weights_dtype=jnp.bfloat16):
    mu = params["mu"].reshape(-1)
    var = params["var"].reshape(-1)
    w1 = params["w1"]                 # (F, C), stored as (in, out)
    b1 = params["b1"].reshape(-1)
    w2 = params["w2"]                 # (C, C)
    b2 = params["b2"].reshape(-1)
    g1 = params["ln1_g"].reshape(-1)
    be1 = params["ln1_b"].reshape(-1)
    g2 = params["ln2_g"].reshape(-1)
    be2 = params["ln2_b"].reshape(-1)

    F, C = w1.shape
    assert sum(seg_dims) == F, (seg_dims, F)
    Cp = _round_up(C, LANE)

    # Fold EMA normalizer into layer-1 weights/bias (inference path):
    #   w1' = diag(1/sqrt(var+eps)) @ w1 ;  b1' = b1 - (mu/sqrt(var+eps)) @ w1
    inv_sigma = lax.rsqrt(var + EMA_EPS)
    w1f = w1 * inv_sigma[:, None]
    b1f = b1 - (mu * inv_sigma) @ w1

    # Segment-aligned row layout: each obs segment's rows start on an
    # 8-sublane boundary so the kernel's static W1 slices are aligned.
    seg_rows = []
    off = 0
    for d in seg_dims:
        seg_rows.append((off, int(d)))
        off += _round_up(int(d), SUBLANE)
    Fp = _round_up(off, SUBLANE)

    w1p = jnp.zeros((Fp, Cp), jnp.float32)
    src = 0
    for (row, d) in seg_rows:
        w1p = w1p.at[row:row + d, :C].set(w1f[src:src + d])
        src += d

    w2p = jnp.pad(w2, ((0, Cp - C), (0, Cp - C)))

    def pad_row(a):
        return jnp.pad(a, (0, Cp - a.shape[0]))

    zeros = jnp.zeros((Cp,), jnp.float32)
    vecs = jnp.stack([pad_row(b1f), pad_row(g1), pad_row(be1),
                      pad_row(b2), pad_row(g2), pad_row(be2),
                      zeros, zeros], axis=0)                    # (8, Cp)

    return {
        "F": F, "C": C, "Fp": Fp, "Cp": Cp,
        "seg_dims": tuple(int(d) for d in seg_dims),
        "seg_rows": tuple(seg_rows),
        "w1": w1p.astype(weights_dtype),
        "w2": w2p.astype(weights_dtype),
        "vecs": vecs.astype(jnp.float32),
    }


# --------------------------------------------------------------------------- #
# Batch-tile selection (feedback items 1 & 2)
# --------------------------------------------------------------------------- #
def _pick_tb(B):
    if B <= SUBLANE:
        return B                      # full-extent block, always legal
    # Target >= 2 grid steps (shards across both v7x TensorCores) while
    # capping the tile at 1024 rows (~2 MiB double-buffered).
    tb = _round_up(pl.cdiv(B, 2), SUBLANE)
    tb = min(1024, tb, (B // SUBLANE) * SUBLANE)
    return max(tb, SUBLANE)


# --------------------------------------------------------------------------- #
# Forward wrapper
# --------------------------------------------------------------------------- #
def tdm_critic_forward(obs_tensors, prep, *, trim_output=True,
                       out_dtype=jnp.float32):
    (self_obs, teammate_obs, opponent_obs, lidar, hp, magazine, alive,
     opponent_masks) = obs_tensors
    B = opponent_masks.shape[0]
    C, Cp, Fp = prep["C"], prep["Cp"], prep["Fp"]
    seg_rows = prep["seg_rows"]

    # Trailing-dim flattens only (row-major collapse => free bitcast reshape).
    # No concat / pad / cast round-trip through HBM: the kernel reads the
    # original observation tensors directly and sums per-segment matmuls.
    segs = [
        self_obs.reshape(B, -1),
        teammate_obs.reshape(B, -1),
        opponent_obs.reshape(B, -1),
        lidar.reshape(B, -1),
        hp.reshape(B, -1),
        magazine.reshape(B, -1),
        alive.reshape(B, -1),
    ]
    seg_dims = tuple(int(s.shape[1]) for s in segs)
    assert seg_dims == prep["seg_dims"], (seg_dims, prep["seg_dims"])

    tb = _pick_tb(B)
    grid = (pl.cdiv(B, tb),)

    # VMEM budget (portable across generations): double-buffered obs + output
    # tiles plus resident weights must stay under the smallest scoped default
    # (16 MiB on v5e; 32 MiB on v6e/v7x; v7x physical VMEM is only 64 MiB).
    vmem_bytes = (2 * tb * sum(seg_dims) * 4
                  + 2 * tb * Cp * jnp.dtype(out_dtype).itemsize
                  + 2 * (Fp * Cp + Cp * Cp) * prep["w1"].dtype.itemsize
                  + 2 * 8 * Cp * 4)
    assert vmem_bytes < 16 * 1024 * 1024, vmem_bytes

    def batch_spec(d):
        return pl.BlockSpec((tb, d), lambda i: (i, 0))

    def weight_spec(shape):
        # Constant block index -> block stays resident in VMEM across steps
        # (no per-step re-fetch).
        return pl.BlockSpec(shape, lambda i: (0, 0))

    itemsize_w = prep["w1"].dtype.itemsize
    obs_bytes = sum(B * d * s.dtype.itemsize for s, d in zip(segs, seg_dims))
    flops = int(2 * B * (sum(seg_dims) * Cp + Cp * Cp))
    bytes_accessed = int(obs_bytes
                         + itemsize_w * (prep["w1"].size + prep["w2"].size)
                         + 4 * prep["vecs"].size
                         + B * Cp * jnp.dtype(out_dtype).itemsize)

    out = pl.pallas_call(
        partial(critic_kernel, c_real=C, seg_rows=seg_rows),
        out_shape=jax.ShapeDtypeStruct((B, Cp), out_dtype),
        grid_spec=pltpu.PrefetchScalarGridSpec(
            num_scalar_prefetch=0,
            grid=grid,
            in_specs=[batch_spec(d) for d in seg_dims] + [
                weight_spec((Fp, Cp)),     # folded W1 (segment-aligned rows)
                weight_spec((Cp, Cp)),     # W2
                weight_spec((8, Cp)),      # packed b1/g1/be1/b2/g2/be2
            ],
            out_specs=pl.BlockSpec((tb, Cp), lambda i: (i, 0)),
        ),
        compiler_params=pltpu.CompilerParams(
            dimension_semantics=("parallel",)),
        cost_estimate=pl.CostEstimate(
            flops=flops, transcendentals=2 * B, bytes_accessed=bytes_accessed),
    )(*segs, prep["w1"], prep["w2"], prep["vecs"])

    if trim_output:
        return out[:, :C]
    # Lane-dense padded output; lanes [C:Cp] are exactly zero.  Prefer this
    # for downstream consumers to avoid the extra slice-copy HBM pass.
    return out


# --------------------------------------------------------------------------- #
# Parameter init + plain-JAX reference (PyTorch semantics, unfolded/unpadded)
# --------------------------------------------------------------------------- #
def init_params(key, num_obs_features, num_channels):
    ks = jax.random.split(key, 4)

    def linear_init(k, fan_in, fan_out):
        bound = 1.0 / math.sqrt(fan_in)
        kw, kb = jax.random.split(k)
        w = jax.random.uniform(kw, (fan_in, fan_out), jnp.float32, -bound, bound)
        b = jax.random.uniform(kb, (1, fan_out), jnp.float32, -bound, bound)
        return w, b

    w1, b1 = linear_init(ks[0], num_obs_features, num_channels)
    w2, b2 = linear_init(ks[1], num_channels, num_channels)

    # Non-trivial EMA stats so the fold-into-W1 path is actually exercised.
    mu = 0.1 * jax.random.normal(ks[2], (1, num_obs_features), jnp.float32)
    var = jax.random.uniform(ks[3], (1, num_obs_features), jnp.float32, 0.5, 1.5)

    return {
        "mu": mu, "var": var,
        "w1": w1, "b1": b1,
        "ln1_g": jnp.ones((1, num_channels), jnp.float32),
        "ln1_b": jnp.zeros((1, num_channels), jnp.float32),
        "w2": w2, "b2": b2,
        "ln2_g": jnp.ones((1, num_channels), jnp.float32),
        "ln2_b": jnp.zeros((1, num_channels), jnp.float32),
    }


def reference_forward(obs_tensors, params):
    (self_obs, teammate_obs, opponent_obs, lidar, hp, magazine, alive,
     opponent_masks) = obs_tensors
    B = opponent_masks.shape[0]
    x = jnp.concatenate(
        [self_obs.reshape(B, -1), teammate_obs.reshape(B, -1),
         opponent_obs.reshape(B, -1), lidar, hp.reshape(B, -1),
         magazine.reshape(B, -1), alive.reshape(B, -1)], axis=1
    ).astype(jnp.float32)
    x = (x - params["mu"]) / jnp.sqrt(params["var"] + EMA_EPS)

    def layer(x, w, b, g, be):
        h = x @ w + b
        m = h.mean(-1, keepdims=True)
        v = ((h - m) ** 2).mean(-1, keepdims=True)
        h = (h - m) / jnp.sqrt(v + LN_EPS)
        return jnp.maximum(h * g + be, 0.0)

    h = layer(x, params["w1"], params["b1"], params["ln1_g"], params["ln1_b"])
    h = layer(h, params["w2"], params["b2"], params["ln2_g"], params["ln2_b"])
    return h


# --------------------------------------------------------------------------- #
if __name__ == "__main__":
    key = jax.random.PRNGKey(0)
    kobs, kparam = jax.random.split(key)

    # NOTE: at such tiny B the call is pure launch overhead on any generation —
    # production callers should batch many envs/timesteps into one call.
    B = 8            # batch
    C = 32           # num_channels (MLP hidden width)

    k = jax.random.split(kobs, 8)
    self_obs       = jax.random.normal(k[0], (B, 16),    jnp.float32)
    teammate_obs   = jax.random.normal(k[1], (B, 1, 16), jnp.float32)
    opponent_obs   = jax.random.normal(k[2], (B, 2, 16), jnp.float32)
    lidar          = jax.random.normal(k[3], (B, 32),    jnp.float32)
    hp             = jax.random.normal(k[4], (B, 4),     jnp.float32)
    magazine       = jax.random.normal(k[5], (B, 4),     jnp.float32)
    alive          = jax.random.normal(k[6], (B, 4),     jnp.float32)
    opponent_masks = jnp.ones((B, 2), jnp.float32)

    obs_tensors = (self_obs, teammate_obs, opponent_obs, lidar, hp,
                   magazine, alive, opponent_masks)

    seg_dims = obs_seg_dims(obs_tensors)          # (16, 16, 32, 32, 4, 4, 4)
    num_obs_features = sum(seg_dims)              # = 108
    params = init_params(kparam, num_obs_features, C)
    ref = reference_forward(obs_tensors, params)

    # Default path: bf16 weights (native MXU dtype) + padded lane-dense output.
    prep = prepare_params(params, seg_dims)       # weights_dtype=bf16 default
    out_pad = jax.block_until_ready(
        tdm_critic_forward(obs_tensors, prep, trim_output=False))
    assert out_pad.shape == (B, prep["Cp"]), out_pad.shape
    assert bool(jnp.all(out_pad[:, C:] == 0.0))   # padded lanes exactly zero
    assert jnp.allclose(out_pad[:, :C], ref, atol=0.2, rtol=0.2), \
        float(jnp.max(jnp.abs(out_pad[:, :C] - ref)))

    # Exact-semantics check: f32 weights, trimmed (B, C) output, tight tol.
    prep_f32 = prepare_params(params, seg_dims, weights_dtype=jnp.float32)
    out = jax.block_until_ready(tdm_critic_forward(obs_tensors, prep_f32))
    assert out.shape == (B, C), out.shape
    assert jnp.allclose(out, ref, atol=1e-3, rtol=1e-3), \
        float(jnp.max(jnp.abs(out - ref)))

    print("KERNEL_OK")
</pallas_src>

<mosaic_0001>
module attributes {stable_mosaic.version = 11 : i64} {
  func.func @critic_kernel(%arg0: i32, %arg1: memref<8x16xf32, #tpu.memory_space<vmem>>, %arg2: memref<8x16xf32, #tpu.memory_space<vmem>>, %arg3: memref<8x32xf32, #tpu.memory_space<vmem>>, %arg4: memref<8x32xf32, #tpu.memory_space<vmem>>, %arg5: memref<8x4xf32, #tpu.memory_space<vmem>>, %arg6: memref<8x4xf32, #tpu.memory_space<vmem>>, %arg7: memref<8x4xf32, #tpu.memory_space<vmem>>, %arg8: memref<120x128xbf16, #tpu.memory_space<vmem>>, %arg9: memref<128x128xbf16, #tpu.memory_space<vmem>>, %arg10: memref<8x128xf32, #tpu.memory_space<vmem>>, %arg11: memref<8x128xf32, #tpu.memory_space<vmem>>) attributes {dimension_semantics = [#tpu.dimension_semantics<parallel>], iteration_bounds = array<i64: 1>, scalar_prefetch = 0 : i64, scratch_operands = 0 : i64, tpu.core_type = #tpu.core_type<tc>, window_params = [{transform_indices = @transform_0, window_bounds = array<i64: 8, 16>}, {transform_indices = @transform_1, window_bounds = array<i64: 8, 16>}, {transform_indices = @transform_2, window_bounds = array<i64: 8, 32>}, {transform_indices = @transform_3, window_bounds = array<i64: 8, 32>}, {transform_indices = @transform_4, window_bounds = array<i64: 8, 4>}, {transform_indices = @transform_5, window_bounds = array<i64: 8, 4>}, {transform_indices = @transform_6, window_bounds = array<i64: 8, 4>}, {pipeline_mode = #tpu.pipeline_mode<synchronous>, transform_indices = @transform_7, window_bounds = array<i64: 120, 128>}, {pipeline_mode = #tpu.pipeline_mode<synchronous>, transform_indices = @transform_8, window_bounds = array<i64: 128, 128>}, {pipeline_mode = #tpu.pipeline_mode<synchronous>, transform_indices = @transform_9, window_bounds = array<i64: 8, 128>}, {transform_indices = @transform_10, window_bounds = array<i64: 8, 128>}]} {
    %c0 = arith.constant 0 : index
    %c0_0 = arith.constant 0 : index
    %0 = vector.load %arg1[%c0, %c0_0] : memref<8x16xf32, #tpu.memory_space<vmem>>, vector<8x16xf32>
    %1 = arith.truncf %0 : vector<8x16xf32> to vector<8x16xbf16>
    %c0_1 = arith.constant 0 : index
    %c0_2 = arith.constant 0 : index
    %2 = vector.load %arg8[%c0_1, %c0_2] : memref<120x128xbf16, #tpu.memory_space<vmem>>, vector<16x128xbf16>
    %cst = arith.constant dense<0.000000e+00> : vector<8x128xf32>
    %3 = tpu.matmul %1, %2, %cst {dimension_numbers = #tpu.dot_dimension_numbers<[1], [0], [0], [1], [0, 0, 1, 1], [], []>} : vector<8x16xbf16>, vector<16x128xbf16>, vector<8x128xf32> -> vector<8x128xf32>
    %c0_3 = arith.constant 0 : index
    %c0_4 = arith.constant 0 : index
    %4 = vector.load %arg2[%c0_3, %c0_4] : memref<8x16xf32, #tpu.memory_space<vmem>>, vector<8x16xf32>
    %5 = arith.truncf %4 : vector<8x16xf32> to vector<8x16xbf16>
    %c16 = arith.constant 16 : index
    %c0_5 = arith.constant 0 : index
    %6 = vector.load %arg8[%c16, %c0_5] : memref<120x128xbf16, #tpu.memory_space<vmem>>, vector<16x128xbf16>
    %cst_6 = arith.constant dense<0.000000e+00> : vector<8x128xf32>
    %7 = tpu.matmul %5, %6, %cst_6 {dimension_numbers = #tpu.dot_dimension_numbers<[1], [0], [0], [1], [0, 0, 1, 1], [], []>} : vector<8x16xbf16>, vector<16x128xbf16>, vector<8x128xf32> -> vector<8x128xf32>
    %8 = arith.addf %3, %7 : vector<8x128xf32>
    %c0_7 = arith.constant 0 : index
    %c0_8 = arith.constant 0 : index
    %9 = vector.load %arg3[%c0_7, %c0_8] : memref<8x32xf32, #tpu.memory_space<vmem>>, vector<8x32xf32>
    %10 = arith.truncf %9 : vector<8x32xf32> to vector<8x32xbf16>
    %c32 = arith.constant 32 : index
    %c0_9 = arith.constant 0 : index
    %11 = vector.load %arg8[%c32, %c0_9] : memref<120x128xbf16, #tpu.memory_space<vmem>>, vector<32x128xbf16>
    %cst_10 = arith.constant dense<0.000000e+00> : vector<8x128xf32>
    %12 = tpu.matmul %10, %11, %cst_10 {dimension_numbers = #tpu.dot_dimension_numbers<[1], [0], [0], [1], [0, 0, 1, 1], [], []>} : vector<8x32xbf16>, vector<32x128xbf16>, vector<8x128xf32> -> vector<8x128xf32>
    %13 = arith.addf %8, %12 : vector<8x128xf32>
    %c0_11 = arith.constant 0 : index
    %c0_12 = arith.constant 0 : index
    %14 = vector.load %arg4[%c0_11, %c0_12] : memref<8x32xf32, #tpu.memory_space<vmem>>, vector<8x32xf32>
    %15 = arith.truncf %14 : vector<8x32xf32> to vector<8x32xbf16>
    %c64 = arith.constant 64 : index
    %c0_13 = arith.constant 0 : index
    %16 = vector.load %arg8[%c64, %c0_13] : memref<120x128xbf16, #tpu.memory_space<vmem>>, vector<32x128xbf16>
    %cst_14 = arith.constant dense<0.000000e+00> : vector<8x128xf32>
    %17 = tpu.matmul %15, %16, %cst_14 {dimension_numbers = #tpu.dot_dimension_numbers<[1], [0], [0], [1], [0, 0, 1, 1], [], []>} : vector<8x32xbf16>, vector<32x128xbf16>, vector<8x128xf32> -> vector<8x128xf32>
    %18 = arith.addf %13, %17 : vector<8x128xf32>
    %c0_15 = arith.constant 0 : index
    %c0_16 = arith.constant 0 : index
    %19 = vector.load %arg5[%c0_15, %c0_16] : memref<8x4xf32, #tpu.memory_space<vmem>>, vector<8x4xf32>
    %20 = arith.truncf %19 : vector<8x4xf32> to vector<8x4xbf16>
    %c96 = arith.constant 96 : index
    %c0_17 = arith.constant 0 : index
    %21 = vector.load %arg8[%c96, %c0_17] : memref<120x128xbf16, #tpu.memory_space<vmem>>, vector<4x128xbf16>
    %cst_18 = arith.constant dense<0.000000e+00> : vector<8x128xf32>
    %22 = tpu.matmul %20, %21, %cst_18 {dimension_numbers = #tpu.dot_dimension_numbers<[1], [0], [0], [1], [0, 0, 1, 1], [], []>} : vector<8x4xbf16>, vector<4x128xbf16>, vector<8x128xf32> -> vector<8x128xf32>
    %23 = arith.addf %18, %22 : vector<8x128xf32>
    %c0_19 = arith.constant 0 : index
    %c0_20 = arith.constant 0 : index
    %24 = vector.load %arg6[%c0_19, %c0_20] : memref<8x4xf32, #tpu.memory_space<vmem>>, vector<8x4xf32>
    %25 = arith.truncf %24 : vector<8x4xf32> to vector<8x4xbf16>
    %c104 = arith.constant 104 : index
    %c0_21 = arith.constant 0 : index
    %26 = vector.load %arg8[%c104, %c0_21] : memref<120x128xbf16, #tpu.memory_space<vmem>>, vector<4x128xbf16>
    %cst_22 = arith.constant dense<0.000000e+00> : vector<8x128xf32>
    %27 = tpu.matmul %25, %26, %cst_22 {dimension_numbers = #tpu.dot_dimension_numbers<[1], [0], [0], [1], [0, 0, 1, 1], [], []>} : vector<8x4xbf16>, vector<4x128xbf16>, vector<8x128xf32> -> vector<8x128xf32>
    %28 = arith.addf %23, %27 : vector<8x128xf32>
    %c0_23 = arith.constant 0 : index
    %c0_24 = arith.constant 0 : index
    %29 = vector.load %arg7[%c0_23, %c0_24] : memref<8x4xf32, #tpu.memory_space<vmem>>, vector<8x4xf32>
    %30 = arith.truncf %29 : vector<8x4xf32> to vector<8x4xbf16>
    %c112 = arith.constant 112 : index
    %c0_25 = arith.constant 0 : index
    %31 = vector.load %arg8[%c112, %c0_25] : memref<120x128xbf16, #tpu.memory_space<vmem>>, vector<4x128xbf16>
    %cst_26 = arith.constant dense<0.000000e+00> : vector<8x128xf32>
    %32 = tpu.matmul %30, %31, %cst_26 {dimension_numbers = #tpu.dot_dimension_numbers<[1], [0], [0], [1], [0, 0, 1, 1], [], []>} : vector<8x4xbf16>, vector<4x128xbf16>, vector<8x128xf32> -> vector<8x128xf32>
    %33 = arith.addf %28, %32 : vector<8x128xf32>
    %c0_27 = arith.constant 0 : index
    %c0_28 = arith.constant 0 : index
    %34 = vector.load %arg10[%c0_27, %c0_28] : memref<8x128xf32, #tpu.memory_space<vmem>>, vector<1x128xf32>
    %35 = vector.broadcast %34 : vector<1x128xf32> to vector<8x128xf32>
    %36 = arith.addf %33, %35 : vector<8x128xf32>
    %c1 = arith.constant 1 : index
    %c0_29 = arith.constant 0 : index
    %37 = vector.load %arg10[%c1, %c0_29] : memref<8x128xf32, #tpu.memory_space<vmem>>, vector<1x128xf32>
    %c2 = arith.constant 2 : index
    %c0_30 = arith.constant 0 : index
    %38 = vector.load %arg10[%c2, %c0_30] : memref<8x128xf32, #tpu.memory_space<vmem>>, vector<1x128xf32>
    %cst_31 = arith.constant dense<0.000000e+00> : vector<8xf32>
    %39 = vector.multi_reduction <add>, %36, %cst_31 [1] : vector<8x128xf32> to vector<8xf32>
    %40 = vector.shape_cast %39 : vector<8xf32> to vector<8x1xf32>
    %41 = arith.mulf %36, %36 : vector<8x128xf32>
    %cst_32 = arith.constant dense<0.000000e+00> : vector<8xf32>
    %42 = vector.multi_reduction <add>, %41, %cst_32 [1] : vector<8x128xf32> to vector<8xf32>
    %43 = vector.shape_cast %42 : vector<8xf32> to vector<8x1xf32>
    %cst_33 = arith.constant 3.125000e-02 : f32
    %44 = vector.broadcast %cst_33 : f32 to vector<8x1xf32>
    %45 = arith.mulf %40, %44 : vector<8x1xf32>
    %cst_34 = arith.constant 3.125000e-02 : f32
    %46 = vector.broadcast %cst_34 : f32 to vector<8x1xf32>
    %47 = arith.mulf %43, %46 : vector<8x1xf32>
    %48 = arith.mulf %45, %45 : vector<8x1xf32>
    %49 = arith.subf %47, %48 : vector<8x1xf32>
    %50 = vector.broadcast %45 : vector<8x1xf32> to vector<8x128xf32>
    %51 = arith.subf %36, %50 : vector<8x128xf32>
    %cst_35 = arith.constant 9.99999974E-6 : f32
    %52 = vector.broadcast %cst_35 : f32 to vector<8x1xf32>
    %53 = arith.addf %49, %52 : vector<8x1xf32>
    %54 = math.rsqrt %53 : vector<8x1xf32>
    %55 = vector.broadcast %54 : vector<8x1xf32> to vector<8x128xf32>
    %56 = arith.mulf %51, %55 : vector<8x128xf32>
    %57 = vector.broadcast %37 : vector<1x128xf32> to vector<8x128xf32>
    %58 = arith.mulf %56, %57 : vector<8x128xf32>
    %59 = vector.broadcast %38 : vector<1x128xf32> to vector<8x128xf32>
    %60 = arith.addf %58, %59 : vector<8x128xf32>
    %cst_36 = arith.constant 0.000000e+00 : f32
    %61 = vector.broadcast %cst_36 : f32 to vector<8x128xf32>
    %62 = arith.maximumf %60, %61 : vector<8x128xf32>
    %63 = arith.truncf %62 : vector<8x128xf32> to vector<8x128xbf16>
    %c0_37 = arith.constant 0 : index
    %c0_38 = arith.constant 0 : index
    %64 = vector.load %arg9[%c0_37, %c0_38] : memref<128x128xbf16, #tpu.memory_space<vmem>>, vector<128x128xbf16>
    %cst_39 = arith.constant dense<0.000000e+00> : vector<8x128xf32>
    %65 = tpu.matmul %63, %64, %cst_39 {dimension_numbers = #tpu.dot_dimension_numbers<[1], [0], [0], [1], [0, 0, 1, 1], [], []>} : vector<8x128xbf16>, vector<128x128xbf16>, vector<8x128xf32> -> vector<8x128xf32>
    %c3 = arith.constant 3 : index
    %c0_40 = arith.constant 0 : index
    %66 = vector.load %arg10[%c3, %c0_40] : memref<8x128xf32, #tpu.memory_space<vmem>>, vector<1x128xf32>
    %67 = vector.broadcast %66 : vector<1x128xf32> to vector<8x128xf32>
    %68 = arith.addf %65, %67 : vector<8x128xf32>
    %c4 = arith.constant 4 : index
    %c0_41 = arith.constant 0 : index
    %69 = vector.load %arg10[%c4, %c0_41] : memref<8x128xf32, #tpu.memory_space<vmem>>, vector<1x128xf32>
    %c5 = arith.constant 5 : index
    %c0_42 = arith.constant 0 : index
    %70 = vector.load %arg10[%c5, %c0_42] : memref<8x128xf32, #tpu.memory_space<vmem>>, vector<1x128xf32>
    %cst_43 = arith.constant dense<0.000000e+00> : vector<8xf32>
    %71 = vector.multi_reduction <add>, %68, %cst_43 [1] : vector<8x128xf32> to vector<8xf32>
    %72 = vector.shape_cast %71 : vector<8xf32> to vector<8x1xf32>
    %73 = arith.mulf %68, %68 : vector<8x128xf32>
    %cst_44 = arith.constant dense<0.000000e+00> : vector<8xf32>
    %74 = vector.multi_reduction <add>, %73, %cst_44 [1] : vector<8x128xf32> to vector<8xf32>
    %75 = vector.shape_cast %74 : vector<8xf32> to vector<8x1xf32>
    %cst_45 = arith.constant 3.125000e-02 : f32
    %76 = vector.broadcast %cst_45 : f32 to vector<8x1xf32>
    %77 = arith.mulf %72, %76 : vector<8x1xf32>
    %cst_46 = arith.constant 3.125000e-02 : f32
    %78 = vector.broadcast %cst_46 : f32 to vector<8x1xf32>
    %79 = arith.mulf %75, %78 : vector<8x1xf32>
    %80 = arith.mulf %77, %77 : vector<8x1xf32>
    %81 = arith.subf %79, %80 : vector<8x1xf32>
    %82 = vector.broadcast %77 : vector<8x1xf32> to vector<8x128xf32>
    %83 = arith.subf %68, %82 : vector<8x128xf32>
    %cst_47 = arith.constant 9.99999974E-6 : f32
    %84 = vector.broadcast %cst_47 : f32 to vector<8x1xf32>
    %85 = arith.addf %81, %84 : vector<8x1xf32>
    %86 = math.rsqrt %85 : vector<8x1xf32>
    %87 = vector.broadcast %86 : vector<8x1xf32> to vector<8x128xf32>
    %88 = arith.mulf %83, %87 : vector<8x128xf32>
    %89 = vector.broadcast %69 : vector<1x128xf32> to vector<8x128xf32>
    %90 = arith.mulf %88, %89 : vector<8x128xf32>
    %91 = vector.broadcast %70 : vector<1x128xf32> to vector<8x128xf32>
    %92 = arith.addf %90, %91 : vector<8x128xf32>
    %cst_48 = arith.constant 0.000000e+00 : f32
    %93 = vector.broadcast %cst_48 : f32 to vector<8x128xf32>
    %94 = arith.maximumf %92, %93 : vector<8x128xf32>
    %c0_49 = arith.constant 0 : index
    %c0_50 = arith.constant 0 : index
    %95 = vector.load %arg11[%c0_49, %c0_50] : memref<8x128xf32, #tpu.memory_space<vmem>>, vector<8x128xf32>
    tpu.vector_store %arg11[%c0_49, %c0_50], %94 {strides = array<i32>} : memref<8x128xf32, #tpu.memory_space<vmem>>, vector<8x128xf32>,
    return
  }
  func.func @transform_0(%arg0: i32) -> (i32, i32) {
    %c0_i32 = arith.constant 0 : i32
    %c0_i32_0 = arith.constant 0 : i32
    return %arg0, %c0_i32 : i32, i32
  }
  func.func @transform_1(%arg0: i32) -> (i32, i32) {
    %c0_i32 = arith.constant 0 : i32
    %c0_i32_0 = arith.constant 0 : i32
    return %arg0, %c0_i32 : i32, i32
  }
  func.func @transform_2(%arg0: i32) -> (i32, i32) {
    %c0_i32 = arith.constant 0 : i32
    %c0_i32_0 = arith.constant 0 : i32
    return %arg0, %c0_i32 : i32, i32
  }
  func.func @transform_3(%arg0: i32) -> (i32, i32) {
    %c0_i32 = arith.constant 0 : i32
    %c0_i32_0 = arith.constant 0 : i32
    return %arg0, %c0_i32 : i32, i32
  }
  func.func @transform_4(%arg0: i32) -> (i32, i32) {
    %c0_i32 = arith.constant 0 : i32
    %c0_i32_0 = arith.constant 0 : i32
    return %arg0, %c0_i32 : i32, i32
  }
  func.func @transform_5(%arg0: i32) -> (i32, i32) {
    %c0_i32 = arith.constant 0 : i32
    %c0_i32_0 = arith.constant 0 : i32
    return %arg0, %c0_i32 : i32, i32
  }
  func.func @transform_6(%arg0: i32) -> (i32, i32) {
    %c0_i32 = arith.constant 0 : i32
    %c0_i32_0 = arith.constant 0 : i32
    return %arg0, %c0_i32 : i32, i32
  }
  func.func @transform_7(%arg0: i32) -> (i32, i32) {
    %c0_i32 = arith.constant 0 : i32
    %c0_i32_0 = arith.constant 0 : i32
    %c0_i32_1 = arith.constant 0 : i32
    return %c0_i32, %c0_i32_0 : i32, i32
  }
  func.func @transform_8(%arg0: i32) -> (i32, i32) {
    %c0_i32 = arith.constant 0 : i32
    %c0_i32_0 = arith.constant 0 : i32
    %c0_i32_1 = arith.constant 0 : i32
    return %c0_i32, %c0_i32_0 : i32, i32
  }
  func.func @transform_9(%arg0: i32) -> (i32, i32) {
    %c0_i32 = arith.constant 0 : i32
    %c0_i32_0 = arith.constant 0 : i32
    %c0_i32_1 = arith.constant 0 : i32
    return %c0_i32, %c0_i32_0 : i32, i32
  }
  func.func @transform_10(%arg0: i32) -> (i32, i32) {
    %c0_i32 = arith.constant 0 : i32
    %c0_i32_0 = arith.constant 0 : i32
    return %arg0, %c0_i32 : i32, i32
  }
}

</mosaic_0001>

<bundles_post_ra>
// kernel: tpu_custom_call.1
= control target key start
LH: loop header
LB: loop body
LE: loop exit
PB: predicated region body
PF: predicated region fallthrough
CT: control target
= control target key end

     0   :  { %15 = vsyncpa [#allocation3], 0  ;;  %s1215_s0 = inlined_call_operand.hbm [shape: f32[8,16], index: 0, kind: input, shape index: {}]   ;;  %s1216_s1 = inlined_call_operand.hbm [shape: f32[8,16], index: 1, kind: input, shape index: {}]   ;;  %s1217_s2 = inlined_call_operand.hbm [shape: f32[8,32], index: 2, kind: input, shape index: {}]   ;;  %s1218_s3 = inlined_call_operand.hbm [shape: f32[8,32], index: 3, kind: input, shape index: {}]   ;;  %s1219_s4 = inlined_call_operand.vmem [shape: f32[8,4], index: 4, kind: input, shape index: {}]   ;;  %s1220_s5 = inlined_call_operand.vmem [shape: f32[8,4], index: 5, kind: input, shape index: {}]   ;;  %s1221_s6 = inlined_call_operand.vmem [shape: f32[8,4], index: 6, kind: input, shape index: {}]   ;;  %s1222_s7 = inlined_call_operand.hbm [shape: bf16[120,128], index: 7, kind: input, shape index: {}]   ;;  %s1223_s8 = inlined_call_operand.vmem [shape: bf16[128,128], index: 8, kind: input, shape index: {}]   ;;  %s1224_s9 = inlined_call_operand.hbm [shape: f32[8,128], index: 9, kind: input, shape index: {}]   ;;  %s1225_s10 = inlined_call_operand.hbm [shape: f32[8,128], index: 10, kind: output, shape index: {}]  }
   0x1   :  { %16 = vsyncpa [#allocation6], 0 }
   0x2   :  { %17 = vsyncpa [#allocation9], 0 }
   0x3   :  { %18 = vsyncpa [#allocation12], 0 }
   0x4   :  { %19 = vsyncpa [#allocation4], 0  ;;  %s991_s13 = smov [#allocation5]   ;;  %s992_s15 = smov [#allocation8]  }
   0x5   :  { %s36_s14 = sshll.u32 %s991_s13, 4  ;;  %s56_s16 = sshll.u32 %s992_s15, 4  ;;  %s37_s14 = int_to_ptr.vmem [resolvable:$true] %s36_s14  ;;  %s57_s16 = int_to_ptr.vmem [resolvable:$true] %s56_s16 }
   0x6   :  { %s827_s19 = scalar_lea.hbm %s1216_s1, 128 }
   0x7   :  { %p828_p0 = scmp.ne.s32.totalorder %s1216_s1, %s827_s19  ;;  %p831_p1 = scmp.lt.u32.totalorder %s827_s19, %s1216_s1 }
   0x9   :  { %p833_p2 = pnand %p831_p1, %p828_p0 }
   0xb   :  { %836 = shalt.err (!%p833_p2)
}
   0xc   :  { %s837_s24 = scalar_lea.vmem %s37_s14, 128  ;;  %p842_p4 = scmp.lt.s32.totalorder %s37_s14, %s37_s14 }
   0xd   :  { %p838_p3 = scmp.ne.s32.totalorder %s37_s14, %s837_s24  ;;  %p843_p5 = scmp.lt.s32.totalorder %s837_s24, %s837_s24 }
   0xf   :  { %p844_p6 = por %p843_p5, %p842_p4 }
  0x11   :  { %p845_p7 = pnand %p844_p6, %p838_p3 }
  0x13   :  { %848 = shalt.err (!%p845_p7)
}
  0x14   :  { %39 = dma.hbm_to_vmem [thread:$0]  %s1216_s1, 128, %s37_s14, [#allocation6]  }
  0x15   :  { %s849_s29 = scalar_lea.hbm %s1218_s3, 128 }
  0x16   :  { %p850_p8 = scmp.ne.s32.totalorder %s1218_s3, %s849_s29  ;;  %p853_p9 = scmp.lt.u32.totalorder %s849_s29, %s1218_s3 }
  0x18   :  { %p855_p10 = pnand %p853_p9, %p850_p8 }
  0x1a   :  { %858 = shalt.err (!%p855_p10)
}
  0x1b   :  { %s859_s15 = scalar_lea.vmem %s57_s16, 128  ;;  %p864_p12 = scmp.lt.s32.totalorder %s57_s16, %s57_s16 }
  0x1c   :  { %p860_p11 = scmp.ne.s32.totalorder %s57_s16, %s859_s15  ;;  %p865_p13 = scmp.lt.s32.totalorder %s859_s15, %s859_s15 }
  0x1e   :  { %p866_p0 = por %p865_p13, %p864_p12 }
  0x20   :  { %p867_p1 = pnand %p866_p0, %p860_p11 }
  0x22   :  { %870 = shalt.err (!%p867_p1)
}
  0x23   :  { %59 = dma.hbm_to_vmem [thread:$0]  %s1218_s3, 128, %s57_s16, [#allocation9]  }
  0x24   :  { %s993_s17 = smov [#allocation2]   ;;  %s994_s19 = smov [#allocation7]  }
  0x25   :  { %s26_s18 = sshll.u32 %s993_s17, 4  ;;  %s46_s20 = sshll.u32 %s994_s19, 4  ;;  %s27_s18 = int_to_ptr.vmem [resolvable:$true] %s26_s18  ;;  %s47_s20 = int_to_ptr.vmem [resolvable:$true] %s46_s20 }
  0x26   :  { %s871_s23 = scalar_lea.hbm %s1215_s0, 128 }
  0x27   :  { %p872_p2 = scmp.ne.s32.totalorder %s1215_s0, %s871_s23  ;;  %p875_p3 = scmp.lt.u32.totalorder %s871_s23, %s1215_s0 }
  0x29   :  { %p877_p4 = pnand %p875_p3, %p872_p2 }
  0x2b   :  { %880 = shalt.err (!%p877_p4)
}
  0x2c   :  { %s881_s3 = scalar_lea.vmem %s27_s18, 128  ;;  %p886_p6 = scmp.lt.s32.totalorder %s27_s18, %s27_s18 }
  0x2d   :  { %p882_p5 = scmp.ne.s32.totalorder %s27_s18, %s881_s3  ;;  %p887_p7 = scmp.lt.s32.totalorder %s881_s3, %s881_s3 }
  0x2f   :  { %p888_p8 = por %p887_p7, %p886_p6 }
  0x31   :  { %p889_p9 = pnand %p888_p8, %p882_p5 }
  0x33   :  { %892 = shalt.err (!%p889_p9)
}
  0x34   :  { %29 = dma.hbm_to_vmem [thread:$0]  %s1215_s0, 128, %s27_s18, [#allocation3]  }
  0x35   :  { %s893_s11 = scalar_lea.hbm %s1217_s2, 128 }
  0x36   :  { %p894_p10 = scmp.ne.s32.totalorder %s1217_s2, %s893_s11  ;;  %p897_p11 = scmp.lt.u32.totalorder %s893_s11, %s1217_s2 }
  0x38   :  { %p899_p12 = pnand %p897_p11, %p894_p10 }
  0x3a   :  { %902 = shalt.err (!%p899_p12)
}
  0x3b   :  { %s903_s14 = scalar_lea.vmem %s47_s20, 128  ;;  %p908_p0 = scmp.lt.s32.totalorder %s47_s20, %s47_s20 }
  0x3c   :  { %p904_p13 = scmp.ne.s32.totalorder %s47_s20, %s903_s14  ;;  %p909_p1 = scmp.lt.s32.totalorder %s903_s14, %s903_s14 }
  0x3e   :  { %p910_p2 = por %p909_p1, %p908_p0 }
  0x40   :  { %p911_p3 = pnand %p910_p2, %p904_p13 }
  0x42   :  { %914 = shalt.err (!%p911_p3)
}
  0x43   :  { %49 = dma.hbm_to_vmem [thread:$0]  %s1217_s2, 128, %s47_s20, [#allocation6]  }
  0x44   :  { %s995_s18 = smov [#allocation10]   ;;  %s915_s23 = scalar_lea.hbm %s1222_s7, 960 }
  0x45   :  { %s71_s19 = sshll.u32 %s995_s18, 4  ;;  %p916_p4 = scmp.ne.s32.totalorder %s1222_s7, %s915_s23  ;;  %s72_s19 = int_to_ptr.vmem [resolvable:$true] %s71_s19 }
  0x46   :  { %p919_p5 = scmp.lt.u32.totalorder %s915_s23, %s1222_s7 }
  0x48   :  { %p921_p6 = pnand %p919_p5, %p916_p4 }
  0x4a   :  { %924 = shalt.err (!%p921_p6)
}
  0x4b   :  { %s925_s3 = scalar_lea.vmem %s72_s19, 960  ;;  %p930_p8 = scmp.lt.s32.totalorder %s72_s19, %s72_s19 }
  0x4c   :  { %p926_p7 = scmp.ne.s32.totalorder %s72_s19, %s925_s3  ;;  %p931_p9 = scmp.lt.s32.totalorder %s925_s3, %s925_s3 }
  0x4e   :  { %p932_p10 = por %p931_p9, %p930_p8 }
  0x50   :  { %p933_p11 = pnand %p932_p10, %p926_p7 }
  0x52   :  { %936 = shalt.err (!%p933_p11)
}
  0x53   :  { %s996_s2 = smov 64   ;;  %s997_s20 = smov 4  }
  0x54   :  { %77 = dma.hbm_to_vmem [thread:$0]  %s1222_s7, 960, %s72_s19, [#allocation9], %s996_s2, %s996_s2, %s997_s20  }
  0x55   :  { %s998_s29 = smov [#allocation11]   ;;  %s937_s13 = scalar_lea.hbm %s1224_s9, 128 }
  0x56   :  { %s86_s30 = sshll.u32 %s998_s29, 4  ;;  %p938_p12 = scmp.ne.s32.totalorder %s1224_s9, %s937_s13  ;;  %s87_s30 = int_to_ptr.vmem [resolvable:$true] %s86_s30 }
  0x57   :  { %p941_p13 = scmp.lt.u32.totalorder %s937_s13, %s1224_s9 }
  0x59   :  { %p943_p0 = pnand %p941_p13, %p938_p12 }
  0x5b   :  { %946 = shalt.err (!%p943_p0)
}
  0x5c   :  { %s947_s17 = scalar_lea.vmem %s87_s30, 128  ;;  %p952_p2 = scmp.lt.s32.totalorder %s87_s30, %s87_s30 }
  0x5d   :  { %p948_p1 = scmp.ne.s32.totalorder %s87_s30, %s947_s17  ;;  %p953_p3 = scmp.lt.s32.totalorder %s947_s17, %s947_s17 }
  0x5f   :  { %p954_p4 = por %p953_p3, %p952_p2 }
  0x61   :  { %p955_p5 = pnand %p954_p4, %p948_p1 }
  0x63   :  { %958 = shalt.err (!%p955_p5)
}
  0x64   :  { %89 = dma.hbm_to_vmem [thread:$0]  %s1224_s9, 128, %s87_s30, [#allocation12]  }
  0x65   :  { %981 = dma.done.wait [#allocation3], 128  }
  0x66   :  { %982 = vsyncadd [#allocation3], 4294967168 }
  0x67   :  { %983 = dma.done.wait [#allocation6], 256  }
  0x68   :  { %984 = vsyncadd [#allocation6], 4294967040 }
  0x69   :  { %985 = dma.done.wait [#allocation9], 1088  }
  0x6a   :  { %986 = vsyncadd [#allocation9], 4294966208 }
  0x6b   :  { %987 = dma.done.wait [#allocation12], 128  }
  0x6c   :  { %988 = vsyncadd [#allocation12], 4294967168  ;;  %v999_v0 = vmov 0.0   ;;  %vm1000_vm0 = vmmov 0   ;;  %v809_v1 = vld [vmem:[#allocation10 + $0x8] sm:$0xff]   ;;  %v810_v2 = vld [vmem:[#allocation10] sm:$0xff]  }
  0x6d   :  { %732 = vmatprep.subr.bf16.mxu0 %v999_v0  ;;  %738 = vmatprep.subr.bf16.mxu1 %v999_v0  ;;  %v113_v3 = vld [vmem:[#allocation5] sm:$0xff]  ;;  %vm123_vm1 = vcmask 130048   ;;  %v109_v4 = vld [vmem:[#allocation2] sm:$0xff]  ;;  %v811_v7 = vld [vmem:[#allocation10 + $0x10] sm:$0xff]   ;;  %vm348_vm2 = vcmask 1041408   ;;  %vm234_vm3 = vcmask 261120  }
  0x6e   :  { %734 = vmatprep.mubr.msk.bf16.mxu0 %vm1000_vm0, %v999_v0  ;;  %740 = vmatprep.mubr.msk.bf16.mxu1 %vm1000_vm0, %v999_v0  ;;  %v114_v5 = vpack.c.bf16 %v113_v3, %v113_v3  ;;  %v110_v6 = vpack.c.bf16 %v109_v4, %v109_v4  ;;  %v812_v8 = vld [vmem:[#allocation10 + $0x18] sm:$0xff]   ;;  %v216_v9 = vld [vmem:[#allocation7] sm:$0xff]  ;;  %v393_v12 = vld [vmem:[%s1220_s5] sm:$0xff]  ;;  %vm344_vm4 = vcmask 31744  }
  0x6f   :  { %733 = vmatpush3.bf16.msra.mxu0 %v809_v1  ;;  %739 = vmatpush3.bf16.msra.mxu1 %v810_v2  ;;  %v395_v10 = vld [vmem:[#allocation10 + $0x34] sm:$0x3]  ;;  %v217_v13 = vpack.c.bf16 %v216_v9, %v216_v9  ;;  %v813_v14 = vld [vmem:[#allocation10 + $0x20] sm:$0xff]   ;;  %v394_v15 = vpack.c.bf16 %v393_v12, %v393_v12  ;;  %v814_v16 = vld [vmem:[#allocation10 + $0x28] sm:$0xff]  }
  0x70   :  { %744 = vmatprep.subr.bf16.mxu0 %v999_v0  ;;  %766 = vmatprep.subr.bf16.mxu1 %v999_v0  ;;  %v400_v11 = vsel %vm348_vm2, %v395_v10, 0  ;;  %v279_v17 = vld [vmem:[#allocation8] sm:$0xff]  ;;  %v343_v18 = vld [vmem:[#allocation10 + $0x30] sm:$0x3]  ;;  %v341_v21 = vld [vmem:[%s1219_s4] sm:$0xff] }
  0x71   :  { %v280_v19 = vpack.c.bf16 %v279_v17, %v279_v17  ;;  %v350_v20 = vsel %vm348_vm2, %v343_v18, 0  ;;  %v445_v22 = vld [vmem:[#allocation10 + $0x38] sm:$0x3]  ;;  %v342_v23 = vpack.c.bf16 %v341_v21, %v341_v21  ;;  %v443_v25 = vld [vmem:[%s1221_s6] sm:$0xff]  ;;  %v693_v57 = vld [vmem:[#allocation11] ss:$0 sm:$0xff] }
  0x72   :  { %735 = vmatmul.mubr.msk.bf16.vlgmr.msra.gmra.mrb[0].mxu0 %vm123_vm1, %v114_v5  ;;  %741 = vmatmul.mubr.msk.bf16.vlgmr.msra.gmra.mrb[0].mxu1 %vm123_vm1, %v110_v6  ;;  %v450_v24 = vsel %vm348_vm2, %v445_v22, 0  ;;  %v444_v26 = vpack.c.bf16 %v443_v25, %v443_v25  ;;  %v815_v1 = vld [vmem:[%s1223_s8] sm:$0xff]   ;;  %v816_v2 = vld [vmem:[%s1223_s8 + $0x8] sm:$0xff]   ;;  %v817_v3 = vld [vmem:[%s1223_s8 + $0x10] sm:$0xff]  }
  0x73   :  { %745 = vmatpush3.bf16.msra.mxu0 %v811_v7  ;;  %748 = vmatprep.mubr.msk.bf16.mxu0 %vm1000_vm0, %v999_v0  ;;  %v818_v4 = vld [vmem:[%s1223_s8 + $0x18] sm:$0xff]   ;;  %v819_v5 = vld [vmem:[%s1223_s8 + $0x20] sm:$0xff]   ;;  %v820_v6 = vld [vmem:[%s1223_s8 + $0x28] sm:$0xff]  }
  0x74   :  { %746 = vmatprep.subr.bf16.mxu0 %v999_v0  ;;  %768 = vmatprep.mubr.msk.bf16.mxu1 %vm1000_vm0, %v999_v0  ;;  %v821_v7 = vld [vmem:[%s1223_s8 + $0x30] sm:$0xff]   ;;  %v694_v18 = vld [vmem:[#allocation11 + $0x1] ss:$0 sm:$0xff] }
  0x75   :  { %767 = vmatpush3.bf16.msra.mxu1 %v400_v11 }
  0x76   :  { %778 = vmatprep.subr.bf16.mxu1 %v999_v0 }
  0x77   :  { %747 = vmatpush3.bf16.msra.mxu0 %v812_v8  ;;  %v822_v8 = vld [vmem:[%s1223_s8 + $0x38] sm:$0xff]   ;;  %s1001_s8 = smov [#allocation13]  }
  0x78   :  { %752 = vmatprep.subr.bf16.mxu0 %v999_v0  ;;  %s668_s15 = sshll.u32 %s1001_s8, 4  ;;  %s669_s15 = int_to_ptr.vmem [resolvable:$true] %s668_s15 }
  0x79   :  { %s959_s1 = scalar_lea.vmem %s669_s15, 128  ;;  %p964_p7 = scmp.lt.s32.totalorder %s669_s15, %s669_s15 }
  0x7a   :  { %749 = vmatmul.mubr.msk.bf16.vlgmr.msra.gmra.mrb[4].mxu0 %vm234_vm3, %v217_v13  ;;  %769 = vmatmul.mubr.msk.bf16.vlgmr.msra.gmra.mrb[4].mxu1 %vm344_vm4, %v394_v15  ;;  %p960_p6 = scmp.ne.s32.totalorder %s669_s15, %s959_s1  ;;  %p965_p8 = scmp.lt.s32.totalorder %s959_s1, %s959_s1 }
  0x7b   :  { %753 = vmatpush3.bf16.msra.mxu0 %v813_v14  ;;  %756 = vmatprep.mubr.msk.bf16.mxu0 %vm1000_vm0, %v999_v0 }
  0x7c   :  { %754 = vmatprep.subr.bf16.mxu0 %v999_v0  ;;  %794 = vmatprep.mubr.msk.bf16.mxu1 %vm1000_vm0, %v999_v0  ;;  %p966_p9 = por %p965_p8, %p964_p7 }
  0x7d   :  { %779 = vmatpush3.bf16.msra.mxu1 %v815_v1 }
  0x7e   :  { %780 = vmatprep.subr.bf16.mxu1 %v999_v0  ;;  %p967_p10 = pnand %p966_p9, %p960_p6 }
  0x7f   :  { %755 = vmatpush3.bf16.msra.mxu0 %v814_v16 }
  0x80   :  { %760 = vmatprep.subr.bf16.mxu0 %v999_v0 }
  0x81   :  { %781 = vmatpush3.bf16.msra.mxu1 %v816_v2 }
  0x82   :  { %757 = vmatmul.mubr.msk.bf16.vlgmr.msra.gmra.mrb[8].mxu0 %vm234_vm3, %v280_v19  ;;  %782 = vmatprep.subr.bf16.mxu1 %v999_v0 }
  0x83   :  { %761 = vmatpush3.bf16.msra.mxu0 %v350_v20  ;;  %762 = vmatprep.mubr.msk.bf16.mxu0 %vm1000_vm0, %v999_v0  ;;  %v695_v20 = vld [vmem:[#allocation11 + $0x2] ss:$0 sm:$0xff] }
  0x84   :  { %772 = vmatprep.subr.bf16.mxu0 %v999_v0 }
  0x85   :  { %783 = vmatpush3.bf16.msra.mxu1 %v817_v3 }
  0x86   :  { %784 = vmatprep.subr.bf16.mxu1 %v999_v0 }
  0x89   :  { %785 = vmatpush3.bf16.msra.mxu1 %v818_v4 }
  0x8a   :  { %763 = vmatmul.mubr.msk.bf16.vlgmr.msra.gmra.mrb[12].mxu0 %vm344_vm4, %v342_v23  ;;  %786 = vmatprep.subr.bf16.mxu1 %v999_v0 }
  0x8b   :  { %773 = vmatpush3.bf16.msra.mxu0 %v450_v24  ;;  %774 = vmatprep.mubr.msk.bf16.mxu0 %vm1000_vm0, %v999_v0 }
  0x8d   :  { %787 = vmatpush3.bf16.msra.mxu1 %v819_v5 }
  0x8e   :  { %788 = vmatprep.subr.bf16.mxu1 %v999_v0 }
  0x91   :  { %789 = vmatpush3.bf16.msra.mxu1 %v820_v6 }
  0x92   :  { %775 = vmatmul.mubr.msk.bf16.vlgmr.msra.gmra.mrb[16].mxu0 %vm344_vm4, %v444_v26  ;;  %790 = vmatprep.subr.bf16.mxu1 %v999_v0 }
  0x95   :  { %791 = vmatpush3.bf16.msra.mxu1 %v821_v7 }
  0x96   :  { %792 = vmatprep.subr.bf16.mxu1 %v999_v0  ;;  %v696_v0 = vld [vmem:[#allocation11 + $0x3] ss:$0 sm:$0xff] }
  0x99   :  { %793 = vmatpush3.bf16.msra.mxu1 %v822_v8 }
 0x145   :  { %v161_v27 = vpop.f32.mrb[0].mxu0  ;;  %v210_v29 = vpop.f32.mrb[0].mxu1 }
 0x146   :  { %v736_v28 = vpop.f32.mrb[1].mxu0  ;;  %v211_v30 = vadd.f32 %v210_v29, %v161_v27  ;;  %v742_v32 = vpop.f32.mrb[1].mxu1 }
 0x147   :  { %v164_v31 = vpop.f32.mrb[2].mxu0  ;;  %v213_v34 = vpop.f32.mrb[2].mxu1 }
 0x148   :  { %v737_v33 = vpop.f32.mrb[3].mxu0  ;;  %v743_v35 = vpop.f32.mrb[3].mxu1 }
 0x14d   :  { %v272_v36 = vpop.f32.mrb[4].mxu0  ;;  %v436_v40 = vpop.f32.mrb[4].mxu1 }
 0x14e   :  { %v278_v37 = vadd.f32 %v272_v36, %v211_v30  ;;  %v750_v38 = vpop.f32.mrb[5].mxu0  ;;  %v770_v42 = vpop.f32.mrb[5].mxu1 }
 0x14f   :  { %v275_v39 = vpop.f32.mrb[6].mxu0  ;;  %v439_v43 = vpop.f32.mrb[6].mxu1  ;;  %v706_v42 = vld [vmem:[#allocation11 + $0x5] ss:$0 sm:$0xff] }
 0x150   :  { %v751_v41 = vpop.f32.mrb[7].mxu0  ;;  %v771_v44 = vpop.f32.mrb[7].mxu1 }
 0x155   :  { %v334_v45 = vpop.f32.mrb[8].mxu0 }
 0x156   :  { %v340_v46 = vadd.f32 %v334_v45, %v278_v37  ;;  %v758_v47 = vpop.f32.mrb[9].mxu0 }
 0x157   :  { %v337_v48 = vpop.f32.mrb[10].mxu0 }
 0x158   :  { %v759_v49 = vpop.f32.mrb[11].mxu0 }
 0x15d   :  { %v386_v50 = vpop.f32.mrb[12].mxu0 }
 0x15e   :  { %v392_v51 = vadd.f32 %v386_v50, %v340_v46  ;;  %v764_v52 = vpop.f32.mrb[13].mxu0 }
 0x15f   :  { %v389_v53 = vpop.f32.mrb[14].mxu0 }
 0x160   :  { %v442_v54 = vadd.f32 %v436_v40, %v392_v51  ;;  %v765_v55 = vpop.f32.mrb[15].mxu0  ;;  %v705_v40 = vld [vmem:[#allocation11 + $0x4] ss:$0 sm:$0xff] }
 0x165   :  { %v486_v56 = vpop.f32.mrb[16].mxu0 }
 0x166   :  { %v492_v58 = vadd.f32 %v486_v56, %v442_v54  ;;  %v776_v59 = vpop.f32.mrb[17].mxu0 }
 0x167   :  { %v489_v60 = vpop.f32.mrb[18].mxu0 }
 0x168   :  { %v498_v61 = vadd.f32 %v693_v57, %v492_v58  ;;  %v777_v62 = vpop.f32.mrb[19].mxu0 }
 0x16a   :  { %501 = vadd.xlane.f32.xlu0 %v498_v61  ;;  %v503_v63 = vmul.f32 %v498_v61, %v498_v61 }
 0x16e   :  { %504 = vadd.xlane.f32.xlu0 %v503_v63 }
 0x1f7   :  { %v502_v9 = vpop.xlane.xlu0 %501 }
 0x1f8   :  { %v506_v10 = vmul.f32 0.03125, %v502_v9 }
 0x1fa   :  { %v508_v12 = vmul.f32 %v506_v10, %v506_v10  ;;  %v510_v16 = vsub.f32 %v498_v61, %v506_v10 }
 0x1fb   :  { %v505_v11 = vpop.xlane.xlu0 %504 }
 0x1fc   :  { %v507_v13 = vmul.f32 0.03125, %v505_v11 }
 0x1fe   :  { %v509_v14 = vsub.f32 %v507_v13, %v508_v12 }
 0x200   :  { %v511_v15 = vadd.f32 1e-05, %v509_v14 }
 0x202   :  { %823 = vrsqrt.f32 %v511_v15 }
 0x20c   :  { %v824_v17 = vpop.eup %823 }
 0x20d   :  { %v513_v19 = vmul.f32 %v824_v17, %v510_v16 }
 0x20f   :  { %v518_v21 = vmul.f32 %v694_v18, %v513_v19 }
 0x211   :  { %v523_v22 = vadd.f32 %v695_v20, %v518_v21 }
 0x213   :  { %v524_v23 = vmax.f32 %v523_v22, 0.0 }
 0x215   :  { %v525_v24 = vpack.c.bf16 %v524_v23, %v524_v23 }
 0x217   :  { %795 = vmatmul.mubr.bf16.vlgmr.msra.gmra.mrb[8].mxu1 %v525_v24 }
 0x2ea   :  { %v629_v25 = vpop.f32.mrb[8].mxu1 }
 0x2eb   :  { %v630_v26 = vadd.f32 %v696_v0, %v629_v25  ;;  %v796_v27 = vpop.f32.mrb[9].mxu1 }
 0x2ec   :  { %v632_v28 = vpop.f32.mrb[10].mxu1 }
 0x2ed   :  { %637 = vadd.xlane.f32.xlu1 %v630_v26  ;;  %v797_v29 = vpop.f32.mrb[11].mxu1  ;;  %v639_v30 = vmul.f32 %v630_v26, %v630_v26 }
 0x2f1   :  { %640 = vadd.xlane.f32.xlu1 %v639_v30 }
 0x37a   :  { %v638_v31 = vpop.xlane.xlu1 %637 }
 0x37b   :  { %v642_v32 = vmul.f32 0.03125, %v638_v31 }
 0x37d   :  { %v644_v34 = vmul.f32 %v642_v32, %v642_v32  ;;  %v646_v38 = vsub.f32 %v630_v26, %v642_v32 }
 0x37e   :  { %v641_v33 = vpop.xlane.xlu1 %640 }
 0x37f   :  { %v643_v35 = vmul.f32 0.03125, %v641_v33 }
 0x381   :  { %v645_v36 = vsub.f32 %v643_v35, %v644_v34 }
 0x383   :  { %v647_v37 = vadd.f32 1e-05, %v645_v36 }
 0x385   :  { %825 = vrsqrt.f32 %v647_v37 }
 0x38f   :  { %v826_v39 = vpop.eup %825 }
 0x390   :  { %v649_v41 = vmul.f32 %v826_v39, %v646_v38 }
 0x392   :  { %v654_v43 = vmul.f32 %v705_v40, %v649_v41 }
 0x394   :  { %v659_v44 = vadd.f32 %v706_v42, %v654_v43 }
 0x396   :  { %v660_v45 = vmax.f32 %v659_v44, 0.0 }
 0x398   :  { %661 = vst [vmem:[#allocation13] sm:$0xff] %v660_v45 }
 0x399   :  { %970 = shalt.err (!%p967_p10)
}
 0x39a   :  { %s971_s17 = scalar_lea.hbm %s1225_s10, 128 }
 0x39b   :  { %p972_p11 = scmp.ne.s32.totalorder %s1225_s10, %s971_s17  ;;  %p975_p12 = scmp.lt.u32.totalorder %s971_s17, %s1225_s10 }
 0x39d   :  { %p977_p13 = pnand %p975_p12, %p972_p11 }
 0x39f   :  { %980 = shalt.err (!%p977_p13)
}
 0x3a0   :  { %671 = dma.vmem_to_hbm [thread:$0]  %s669_s15, 128, %s1225_s10, [#allocation4]  }
 0x3a1   :  { %989 = dma.done.wait [#allocation4], 128  }
 0x3a2   :  { %990 = vsyncadd [#allocation4], 4294967168 }
 0x3a3   :  { %675 = vsyncpa [#allocation3], 1 }
 0x3a4   :  { %676 = vsyncpa [#allocation6], 1 }
 0x3a5   :  { %677 = vsyncpa [#allocation9], 1 }
 0x3a6   :  { %678 = vsyncpa [#allocation12], 1 }
 0x3a7   :  { %679 = vsyncpa [#allocation4], 1 }

</bundles_post_ra>
